<compile_context>
chip_gen: v5e
topology: v5e:2x2
jax: 0.10.0
libtpu: 0.0.40
codegen_flags: <defaults>
</compile_context>

<pallas_src>
import math

import numpy as np

import jax
import jax.numpy as jnp
from jax.experimental import pallas as pl
from jax.experimental.pallas import tpu as pltpu

# ---- small synthetic config (shapes implied by the module's __init__/forward) ----
VOCAB = 256            # tokenizer vocab size (includes the 2 "new_tokens"); 128-multiple
HIDDEN = 128           # self.llm_embedding_size; 128-multiple (lane-dense)
ENC_OUT = 128          # encoder_output_size (CLIP vision feature dim); 128-multiple
CUTOFF_LEN = 64        # self.cutoff_len (multiple of 16 so bf16 row tiles pack cleanly)
TACT_START_ID = VOCAB - 2   # token id of new_tokens[0]  ("<tact_start>")
TACT_END_ID = VOCAB - 1     # token id of new_tokens[1]  ("<tact_end>")
IGNORE_INDEX = -100


# ------------------------- per-generation tuning knobs ----------------------------
def _round_up(x, m):
    return ((x + m - 1) // m) * m


def _device_kind():
    try:
        return jax.devices()[0].device_kind.lower()
    except Exception:
        return ""


def _vmem_budget_bytes():
    """~75% of physical per-core VMEM: keeps double-buffering alive on v7x's 64 MiB/TC
    while actually using v5e/v6e's 128 MiB instead of a fixed 32 MiB cap."""
    try:
        phys = int(pltpu.get_tpu_info().vmem_capacity_bytes)
    except Exception:
        phys = 64 * 1024 * 1024          # v7x per-TC floor: safe on every generation
    return (phys * 3) // 4


_KIND = _device_kind()
_IS_V5E = "v5" in _KIND                               # v5e / v5 lite (treat v5p the same)
_HAS_BF16_EUP = ("v6" in _KIND) or ("v7" in _KIND)    # bf16 transcendentals on v6e/v7x
_EXP_DTYPE = jnp.bfloat16 if _HAS_BF16_EUP else jnp.float32
_VMEM_LIMIT = _vmem_budget_bytes()


# =============================== Pallas kernels ===================================
def _project_mlp_kernel(x_ref, w1_ref, b1_ref, w2_ref, b2_ref, o_ref):
    # self.project = nn.Sequential(Linear(ENC_OUT, HIDDEN), GELU(), Linear(HIDDEN, HIDDEN))
    # bf16 inputs/weights on the MXU, f32 accumulation, f32 elementwise (v5e-safe GELU).
    x = x_ref[...]
    h = jnp.dot(x, w1_ref[...], preferred_element_type=jnp.float32) + b1_ref[...]
    # exact (erf) GELU — matches torch.nn.GELU() default (approximate='none')
    h = 0.5 * h * (1.0 + jax.lax.erf(h * 0.7071067811865476))
    o = jnp.dot(h.astype(jnp.bfloat16), w2_ref[...],
                preferred_element_type=jnp.float32) + b2_ref[...]
    o_ref[...] = o.astype(o_ref.dtype)


def project_mlp(x, w1, b1, w2, b2):
    """x: (F_pad, ENC_OUT) bf16 -> (F_pad, HIDDEN) bf16.  One call for ALL tactile inserts.

    F_pad must be a multiple of 16 (bf16 sublane packing).  Tiny F -> single tile (no
    pipeline-step overhead); large F -> 256-row tiles streaming M through the MXU.
    """
    f, e = x.shape
    h = w1.shape[1]
    assert f % 16 == 0
    tile_f = f if f <= 256 else 256
    assert f % tile_f == 0
    return pl.pallas_call(
        _project_mlp_kernel,
        out_shape=jax.ShapeDtypeStruct((f, h), jnp.bfloat16),
        grid_spec=pltpu.PrefetchScalarGridSpec(
            num_scalar_prefetch=0,
            grid=(f // tile_f,),
            in_specs=[
                pl.BlockSpec((tile_f, e), lambda i: (i, 0)),
                pl.BlockSpec((e, h), lambda i: (0, 0)),
                pl.BlockSpec((1, h), lambda i: (0, 0)),
                pl.BlockSpec((h, h), lambda i: (0, 0)),
                pl.BlockSpec((1, h), lambda i: (0, 0)),
            ],
            out_specs=pl.BlockSpec((tile_f, h), lambda i: (i, 0)),
        ),
        compiler_params=pltpu.CompilerParams(
            dimension_semantics=("parallel",),
            vmem_limit_bytes=_VMEM_LIMIT),
    )(x, w1, b1.reshape(1, h), w2, b2.reshape(1, h))


def _make_ce_kernel(emit_logits, exp_dtype):
    """Tied LM head + fused shifted cross-entropy (online logsumexp over vocab tiles).

    x_ref:   (tl, H)  bf16 input-embedding tile
    wt_ref:  (H, tv)  bf16 pre-transposed embedding-table tile (MXU-canonical (K, N))
    tgt_ref: (tl, 1)  int32 shifted labels (IGNORE_INDEX => no contribution)
    outputs: nll (tl, 1) f32   [+ optional logits (tl, tv) bf16]
    """
    def kernel(x_ref, wt_ref, tgt_ref, *rest):
        if emit_logits:
            nll_ref, logits_ref, m_sc, l_sc, t_sc = rest
        else:
            nll_ref, m_sc, l_sc, t_sc = rest
        j = pl.program_id(1)

        @pl.when(j == 0)
        def _():
            m_sc[...] = jnp.full_like(m_sc, -jnp.inf)
            l_sc[...] = jnp.zeros_like(l_sc)
            t_sc[...] = jnp.zeros_like(t_sc)

        # (M,K)x(K,N) on the MXU; table already transposed in HBM -> no XLU transpose
        logits = jnp.dot(x_ref[...], wt_ref[...], preferred_element_type=jnp.float32)

        if emit_logits:
            logits_ref[...] = logits.astype(logits_ref.dtype)   # bf16 writeback (halved vst)

        # online logsumexp over the vocab axis
        m_prev = m_sc[...]
        m_new = jnp.maximum(m_prev, jnp.max(logits, axis=-1, keepdims=True))
        alpha = jnp.exp(m_prev - m_new)                          # (tl,1) f32, tiny
        p = jnp.exp((logits - m_new).astype(exp_dtype))          # bulk exp: bf16 EUP on v6e/v7x
        l_sc[...] = alpha * l_sc[...] + jnp.sum(p.astype(jnp.float32), axis=-1, keepdims=True)
        m_sc[...] = m_new

        # gather the target-column logit if it falls inside this vocab tile
        tv = logits.shape[-1]
        local_cols = jax.lax.broadcasted_iota(jnp.int32, logits.shape, 1)
        hit = local_cols == (tgt_ref[...] - j * tv)              # shift the (tl,1) target, not the iota
        t_sc[...] += jnp.sum(jnp.where(hit, logits, 0.0), axis=-1, keepdims=True)

        @pl.when(j == pl.num_programs(1) - 1)
        def _():
            nll_ref[...] = (m_sc[...] + jnp.log(l_sc[...])) - t_sc[...]

    return kernel


def _derive_ce_tiles(l, v, h, emit_logits):
    """Pick (tl, tv) against the per-generation VMEM budget.

    tv: 256-multiple where the vocab allows (v6e/v7x MXU output width).
    tl: as large as the budget allows (dominant HBM cost is the table re-stream,
        (L/tl)*V*H*2 bytes), but keep >=2 row tiles so v7x megacore shards rows.
    """
    if v >= 512 and v % 512 == 0:
        tv = 512
    elif v >= 256 and v % 256 == 0:
        tv = 256
    else:
        tv = v                                        # full (lane-dense 128-multiple) vocab
    n_w_buf = 3 if (_IS_V5E and v // tv >= 3) else 2
    fixed = n_w_buf * h * tv * 2                      # table tiles in flight (bf16)
    per_row = 2 * h * 2 + 2 * 4 + 2 * 4 + 3 * 4       # x (x2 bufs) + tgt + nll + scratch
    if emit_logits:
        per_row += 2 * tv * 2                         # bf16 logits tile (x2 bufs)
    tl = ((_VMEM_LIMIT - fixed) // per_row) // 16 * 16
    tl = int(max(16, min(l, tl, 1024)))
    if l // tl < 2 and l >= 32:                       # >=2 row tiles -> v7x megacore engages
        tl = max(16, (l // 2) // 16 * 16)
    while l % tl:                                     # l is a multiple of 16 -> terminates
        tl -= 16
    return max(tl, 16), tv


def lm_head_ce(x, embed_table_t, shift_tgt, *, return_logits=False):
    """x: (L, H) bf16, embed_table_t: (H, V) bf16 (pre-transposed once in HBM),
    shift_tgt: (L, 1) int32.  Returns (nll (L,1) f32, logits (L,V) bf16 or None).

    Training path (return_logits=False) never writes the (L, V) logits to HBM.
    # TODO(synk): at real V also tile the HIDDEN reduction; H=128 fits a single K tile here.
    """
    l, h = x.shape
    v = embed_table_t.shape[1]
    assert l % 16 == 0, "sequence length must be a multiple of 16 (bf16 row packing)"
    tl, tv = _derive_ce_tiles(l, v, h, return_logits)

    if _IS_V5E and (v // tv) >= 3:
        # deeper buffering of the table stream on v5e's slower HBM
        w_spec = pl.BlockSpec((h, tv), lambda i, j: (0, j), pipeline_mode=pl.Buffered(3))
    else:
        w_spec = pl.BlockSpec((h, tv), lambda i, j: (0, j))

    in_specs = [
        pl.BlockSpec((tl, h), lambda i, j: (i, 0)),
        w_spec,
        pl.BlockSpec((tl, 1), lambda i, j: (i, 0)),
    ]
    out_shapes = [jax.ShapeDtypeStruct((l, 1), jnp.float32)]
    out_specs = [pl.BlockSpec((tl, 1), lambda i, j: (i, 0))]
    if return_logits:
        out_shapes.append(jax.ShapeDtypeStruct((l, v), jnp.bfloat16))
        out_specs.append(pl.BlockSpec((tl, tv), lambda i, j: (i, j)))

    outs = pl.pallas_call(
        _make_ce_kernel(return_logits, _EXP_DTYPE),
        out_shape=tuple(out_shapes),
        grid_spec=pltpu.PrefetchScalarGridSpec(
            num_scalar_prefetch=0,
            grid=(l // tl, v // tv),                  # vocab reduction axis last
            in_specs=in_specs,
            out_specs=tuple(out_specs),
            scratch_shapes=[pltpu.VMEM((tl, 1), jnp.float32)] * 3,
        ),
        compiler_params=pltpu.CompilerParams(
            dimension_semantics=("parallel", "arbitrary"),
            vmem_limit_bytes=_VMEM_LIMIT),
    )(x, embed_table_t, shift_tgt)
    nll = outs[0]
    logits = outs[1] if return_logits else None
    return nll, logits


# ================================ glue (plain JAX) ================================
def embed_tokens(embed_table, token_ids):
    # llm.get_input_embeddings()(ids): a gather from the embedding table (glue).
    return jnp.take(embed_table, token_ids, axis=0)


def clip_encoder_stub(frames, enc_out=ENC_OUT):
    # TODO(synk): CLIPVisionEncoder wraps an external pretrained CLIP model; replaced by
    # a deterministic pooling stub that yields (F, encoder_output_size) features.
    f = frames.shape[0]
    flat = frames.reshape(f, -1).astype(jnp.float32)          # (F, C*H*W), NCHW flattened
    group = flat.shape[1] // enc_out
    feats = flat[:, : group * enc_out].reshape(f, enc_out, group).mean(axis=-1)
    return feats                                              # (F, ENC_OUT) f32


def get_dummy_token(batch_size, question_embeds_len, answer_embeds_len, cutoff_len):
    # PyTorch uses int64 labels; int32 used here (jax default, semantics identical).
    pre = jnp.full((batch_size, question_embeds_len), IGNORE_INDEX, dtype=jnp.int32)
    post = jnp.full(
        (batch_size, cutoff_len - (question_embeds_len + answer_embeds_len)),
        IGNORE_INDEX, dtype=jnp.int32)
    return pre, post


def llm_causal_lm_stub(params, inputs_embeds, labels, attention_mask, return_logits=False):
    # TODO(synk): self.llm is an external pretrained causal LM; stand-in is a tied-embedding
    # LM head with the HF-style shifted cross-entropy fused into one Pallas kernel.
    # attention_mask is unused here: pad rows still produce logits, but their labels are
    # -100 so the loss is unaffected (same as the HF loss semantics).
    del attention_mask
    x = inputs_embeds[0]                                             # (L, H) bf16
    shift_tgt = jnp.concatenate(
        [labels[0, 1:], jnp.full((1,), IGNORE_INDEX, jnp.int32)]).reshape(-1, 1)
    nll, logits = lm_head_ce(x, params["embed_table_t"], shift_tgt,
                             return_logits=return_logits)
    valid = (shift_tgt[:, 0] != IGNORE_INDEX).astype(jnp.float32)
    loss = jnp.sum(nll[:, 0] * valid) / jnp.maximum(jnp.sum(valid), 1.0)
    return {"loss": loss, "logits": None if logits is None else logits[None]}


def multimodal_forward(params, question_chunk_tokens, tactile_frames, answer_tokens,
                       question_embeds_only=False, return_logits=False):
    """Mirrors MultimodalLLMForCausalLM.forward for a single question (batch=1).

    NOTE: bf16 weights + bf16 MXU inputs (f32 accumulation) means loss/logits differ
    slightly (~1e-2) from an f32-weight PyTorch reference — intentional tolerance.
    """
    embed_table = params["embed_table"]                 # (V, H) bf16
    num_tactile = len(tactile_frames)
    frame_counts = [int(f.shape[0]) for f in tactile_frames]

    # 1) batch every tactile insert through ONE projector call (no per-insert launches)
    projected = None
    if num_tactile:
        feats = jnp.concatenate([clip_encoder_stub(f) for f in tactile_frames], axis=0)
        f_tot = feats.shape[0]
        row_tile = 256 if f_tot > 256 else _round_up(f_tot, 16)
        f_pad = _round_up(f_tot, row_tile)              # 16-multiple (bf16 sublane packing)
        feats = jnp.pad(feats, ((0, f_pad - f_tot), (0, 0)))
        projected = project_mlp(feats.astype(jnp.bfloat16), params["w1"], params["b1"],
                                params["w2"], params["b2"])          # (f_pad, H) bf16

    # 2) one flat token-id layout for the whole CUTOFF_LEN sequence (tactile rows = placeholders)
    ids, insert_offsets, pos = [], [], 0
    for tactile_idx, chunk_ids in enumerate(question_chunk_tokens):
        ids.append(chunk_ids.astype(jnp.int32)); pos += int(chunk_ids.shape[0])
        if tactile_idx < num_tactile:
            nf = frame_counts[tactile_idx]
            ids.append(jnp.array([TACT_START_ID], jnp.int32)); pos += 1
            insert_offsets.append((pos, nf))
            ids.append(jnp.zeros((nf,), jnp.int32)); pos += nf        # placeholder rows
            ids.append(jnp.array([TACT_END_ID], jnp.int32)); pos += 1
    question_embeds_len = pos
    answer_embeds_len = int(answer_tokens.shape[1])
    ids.append(answer_tokens[0].astype(jnp.int32)); pos += answer_embeds_len
    pad_len = CUTOFF_LEN - pos
    if pad_len < 0:
        raise ValueError(
            f"question+tactile+answer length {pos} exceeds cutoff_len {CUTOFF_LEN}")
    # TODO(synk): pad rows reuse token id 0's embedding, like the PyTorch reference's zeros().
    ids.append(jnp.zeros((pad_len,), jnp.int32))
    flat_ids = jnp.concatenate(ids)                                   # (CUTOFF_LEN,) int32

    # 3) ONE embedding gather, then ONE gather + select to place the projected tactile rows
    embeds = embed_tokens(embed_table, flat_ids)                      # (CUTOFF_LEN, H) bf16
    if num_tactile:
        src_idx = np.zeros((CUTOFF_LEN,), np.int32)
        is_tact = np.zeros((CUTOFF_LEN,), bool)
        cursor = 0
        for off, nf in insert_offsets:                                # static offsets
            src_idx[off:off + nf] = np.arange(cursor, cursor + nf)
            is_tact[off:off + nf] = True
            cursor += nf
        tact_rows = jnp.take(projected, jnp.asarray(src_idx), axis=0)  # (CUTOFF_LEN, H)
        embeds = jnp.where(jnp.asarray(is_tact)[:, None], tact_rows, embeds)

    question_embeds = embeds[None, :question_embeds_len]              # (1, Q, H)
    if question_embeds_only:
        return None, question_embeds

    input_embeds = embeds[None]                                       # (1, CUTOFF, H)
    full_embeds_len = question_embeds_len + answer_embeds_len
    pre_dummy, post_dummy = get_dummy_token(1, question_embeds_len, answer_embeds_len, CUTOFF_LEN)
    labels = jnp.concatenate([pre_dummy, answer_tokens.astype(jnp.int32), post_dummy], axis=1)
    attention_mask = jnp.concatenate(
        [jnp.ones((1, full_embeds_len), jnp.float32),
         jnp.zeros((1, pad_len), jnp.float32)], axis=1)

    out = llm_causal_lm_stub(params, input_embeds, labels, attention_mask,
                             return_logits=return_logits)
    return out, question_embeds


# ====================================== main ======================================
if __name__ == "__main__":
    key = jax.random.PRNGKey(0)
    k_embed, k_w1, k_w2, k_frames = jax.random.split(key, 4)
    embed_table = (0.02 * jax.random.normal(k_embed, (VOCAB, HIDDEN), jnp.float32)
                   ).astype(jnp.bfloat16)
    params = {
        # bf16 weights (halve HBM->VMEM traffic); kernels accumulate in f32.
        "embed_table": embed_table,
        # one-time (H, V) copy in HBM: MXU-canonical RHS for the tied LM head
        # (avoids a per-step in-VMEM XLU transpose of the (tv, H) weight tile).
        "embed_table_t": embed_table.T,
        "w1": (jax.random.normal(k_w1, (ENC_OUT, HIDDEN), jnp.float32)
               / math.sqrt(ENC_OUT)).astype(jnp.bfloat16),
        "b1": jnp.zeros((HIDDEN,), jnp.float32),
        "w2": (jax.random.normal(k_w2, (HIDDEN, HIDDEN), jnp.float32)
               / math.sqrt(HIDDEN)).astype(jnp.bfloat16),
        "b2": jnp.zeros((HIDDEN,), jnp.float32),
    }
    # question = "... <tact_tokens> ..."  -> 2 pre-tokenized text chunks around 1 tactile insert
    # TODO(synk): tokenizer / encode_text are string ops with no Pallas equivalent; token ids
    # are provided directly.
    question_chunk_tokens = [jnp.array([1, 2, 3, 4, 5], jnp.int32),
                             jnp.array([6, 7, 8], jnp.int32)]
    # one tactile clip: 4 frames, NCHW (F, C, H, W) like the PyTorch CLIP input
    tactile_frames = [jax.random.normal(k_frames, (4, 3, 16, 16), jnp.float32)]
    answer_tokens = jnp.array([[10, 11, 12, 13]], jnp.int32)

    # training path: loss only, (L, V) logits are never materialized or written to HBM
    out, question_embeds = multimodal_forward(
        params, question_chunk_tokens, tactile_frames, answer_tokens)
    jax.block_until_ready((out["loss"], question_embeds))

    # question embeds = chunk0(5) + [start(1) + 4 projected frames + end(1)] + chunk1(3) = 14
    assert question_embeds.shape == (1, 14, HIDDEN)
    assert out["logits"] is None
    assert out["loss"].shape == ()
    assert bool(jnp.isfinite(out["loss"]))

    # inference/debug path: same fused kernel, plus bf16 logits writeback
    out_l, _ = multimodal_forward(
        params, question_chunk_tokens, tactile_frames, answer_tokens, return_logits=True)
    jax.block_until_ready(out_l["logits"])
    assert out_l["logits"].shape == (1, CUTOFF_LEN, VOCAB)
    assert out_l["logits"].dtype == jnp.bfloat16
    assert bool(jnp.allclose(out_l["loss"], out["loss"], atol=2e-2))

    print("KERNEL_OK")
</pallas_src>

<mosaic_0001>
module attributes {stable_mosaic.version = 11 : i64} {
  func.func @_project_mlp_kernel(%arg0: i32, %arg1: memref<16x128xbf16, #tpu.memory_space<vmem>>, %arg2: memref<128x128xbf16, #tpu.memory_space<vmem>>, %arg3: memref<1x128xf32, #tpu.memory_space<vmem>>, %arg4: memref<128x128xbf16, #tpu.memory_space<vmem>>, %arg5: memref<1x128xf32, #tpu.memory_space<vmem>>, %arg6: memref<16x128xbf16, #tpu.memory_space<vmem>>) attributes {dimension_semantics = [#tpu.dimension_semantics<parallel>], iteration_bounds = array<i64: 1>, scalar_prefetch = 0 : i64, scratch_operands = 0 : i64, tpu.core_type = #tpu.core_type<tc>, window_params = [{transform_indices = @transform_0, window_bounds = array<i64: 16, 128>}, {pipeline_mode = #tpu.pipeline_mode<synchronous>, transform_indices = @transform_1, window_bounds = array<i64: 128, 128>}, {pipeline_mode = #tpu.pipeline_mode<synchronous>, transform_indices = @transform_2, window_bounds = array<i64: 1, 128>}, {pipeline_mode = #tpu.pipeline_mode<synchronous>, transform_indices = @transform_3, window_bounds = array<i64: 128, 128>}, {pipeline_mode = #tpu.pipeline_mode<synchronous>, transform_indices = @transform_4, window_bounds = array<i64: 1, 128>}, {transform_indices = @transform_5, window_bounds = array<i64: 16, 128>}]} {
    %c0 = arith.constant 0 : index
    %c0_0 = arith.constant 0 : index
    %0 = vector.load %arg1[%c0, %c0_0] : memref<16x128xbf16, #tpu.memory_space<vmem>>, vector<16x128xbf16>
    %c0_1 = arith.constant 0 : index
    %c0_2 = arith.constant 0 : index
    %1 = vector.load %arg2[%c0_1, %c0_2] : memref<128x128xbf16, #tpu.memory_space<vmem>>, vector<128x128xbf16>
    %cst = arith.constant dense<0.000000e+00> : vector<16x128xf32>
    %2 = tpu.matmul %0, %1, %cst {dimension_numbers = #tpu.dot_dimension_numbers<[1], [0], [0], [1], [0, 0, 1, 1], [], []>} : vector<16x128xbf16>, vector<128x128xbf16>, vector<16x128xf32> -> vector<16x128xf32>
    %c0_3 = arith.constant 0 : index
    %c0_4 = arith.constant 0 : index
    %3 = vector.load %arg3[%c0_3, %c0_4] : memref<1x128xf32, #tpu.memory_space<vmem>>, vector<1x128xf32>
    %4 = vector.broadcast %3 : vector<1x128xf32> to vector<16x128xf32>
    %5 = arith.addf %2, %4 : vector<16x128xf32>
    %cst_5 = arith.constant 5.000000e-01 : f32
    %6 = vector.broadcast %cst_5 : f32 to vector<16x128xf32>
    %7 = arith.mulf %6, %5 : vector<16x128xf32>
    %cst_6 = arith.constant 0.707106769 : f32
    %8 = vector.broadcast %cst_6 : f32 to vector<16x128xf32>
    %9 = arith.mulf %5, %8 : vector<16x128xf32>
    %10 = math.erf %9 : vector<16x128xf32>
    %cst_7 = arith.constant 1.000000e+00 : f32
    %11 = vector.broadcast %cst_7 : f32 to vector<16x128xf32>
    %12 = arith.addf %11, %10 : vector<16x128xf32>
    %13 = arith.mulf %7, %12 : vector<16x128xf32>
    %14 = arith.truncf %13 : vector<16x128xf32> to vector<16x128xbf16>
    %c0_8 = arith.constant 0 : index
    %c0_9 = arith.constant 0 : index
    %15 = vector.load %arg4[%c0_8, %c0_9] : memref<128x128xbf16, #tpu.memory_space<vmem>>, vector<128x128xbf16>
    %cst_10 = arith.constant dense<0.000000e+00> : vector<16x128xf32>
    %16 = tpu.matmul %14, %15, %cst_10 {dimension_numbers = #tpu.dot_dimension_numbers<[1], [0], [0], [1], [0, 0, 1, 1], [], []>} : vector<16x128xbf16>, vector<128x128xbf16>, vector<16x128xf32> -> vector<16x128xf32>
    %c0_11 = arith.constant 0 : index
    %c0_12 = arith.constant 0 : index
    %17 = vector.load %arg5[%c0_11, %c0_12] : memref<1x128xf32, #tpu.memory_space<vmem>>, vector<1x128xf32>
    %18 = vector.broadcast %17 : vector<1x128xf32> to vector<16x128xf32>
    %19 = arith.addf %16, %18 : vector<16x128xf32>
    %20 = arith.truncf %19 : vector<16x128xf32> to vector<16x128xbf16>
    %c0_13 = arith.constant 0 : index
    %c0_14 = arith.constant 0 : index
    %21 = vector.load %arg6[%c0_13, %c0_14] : memref<16x128xbf16, #tpu.memory_space<vmem>>, vector<16x128xbf16>
    tpu.vector_store %arg6[%c0_13, %c0_14], %20 {strides = array<i32>} : memref<16x128xbf16, #tpu.memory_space<vmem>>, vector<16x128xbf16>,
    return
  }
  func.func @transform_0(%arg0: i32) -> (i32, i32) {
    %c0_i32 = arith.constant 0 : i32
    %c0_i32_0 = arith.constant 0 : i32
    return %arg0, %c0_i32 : i32, i32
  }
  func.func @transform_1(%arg0: i32) -> (i32, i32) {
    %c0_i32 = arith.constant 0 : i32
    %c0_i32_0 = arith.constant 0 : i32
    %c0_i32_1 = arith.constant 0 : i32
    return %c0_i32, %c0_i32_0 : i32, i32
  }
  func.func @transform_2(%arg0: i32) -> (i32, i32) {
    %c0_i32 = arith.constant 0 : i32
    %c0_i32_0 = arith.constant 0 : i32
    %c0_i32_1 = arith.constant 0 : i32
    return %c0_i32, %c0_i32_0 : i32, i32
  }
  func.func @transform_3(%arg0: i32) -> (i32, i32) {
    %c0_i32 = arith.constant 0 : i32
    %c0_i32_0 = arith.constant 0 : i32
    %c0_i32_1 = arith.constant 0 : i32
    return %c0_i32, %c0_i32_0 : i32, i32
  }
  func.func @transform_4(%arg0: i32) -> (i32, i32) {
    %c0_i32 = arith.constant 0 : i32
    %c0_i32_0 = arith.constant 0 : i32
    %c0_i32_1 = arith.constant 0 : i32
    return %c0_i32, %c0_i32_0 : i32, i32
  }
  func.func @transform_5(%arg0: i32) -> (i32, i32) {
    %c0_i32 = arith.constant 0 : i32
    %c0_i32_0 = arith.constant 0 : i32
    return %arg0, %c0_i32 : i32, i32
  }
}

</mosaic_0001>

<bundles_post_ra>
// kernel: tpu_custom_call.1
= control target key start
LH: loop header
LB: loop body
LE: loop exit
PB: predicated region body
PF: predicated region fallthrough
CT: control target
= control target key end

     0   :  { %10 = vsyncpa [#allocation3], 0  ;;  %s643_s0 = inlined_call_operand.hbm [shape: bf16[16,128], index: 0, kind: input, shape index: {}]   ;;  %s644_s1 = inlined_call_operand.hbm [shape: bf16[128,128], index: 1, kind: input, shape index: {}]   ;;  %s645_s2 = inlined_call_operand.vmem [shape: f32[1,128], index: 2, kind: input, shape index: {}]   ;;  %s646_s3 = inlined_call_operand.hbm [shape: bf16[128,128], index: 3, kind: input, shape index: {}]   ;;  %s647_s4 = inlined_call_operand.vmem [shape: f32[1,128], index: 4, kind: input, shape index: {}]   ;;  %s648_s5 = inlined_call_operand.hbm [shape: bf16[16,128], index: 5, kind: output, shape index: {}]  }
   0x1   :  { %11 = vsyncpa [#allocation6], 0 }
   0x2   :  { %12 = vsyncpa [#allocation4], 0  ;;  %s30_s20 = sshll.u32 %s644_s1, 4  ;;  %s559_s21 = smov [#allocation5]   ;;  %s31_s20 = int_to_ptr.hbm [resolvable:$true] %s30_s20 }
   0x3   :  { %s32_s22 = sshll.u32 %s559_s21, 4  ;;  %s17_s25 = sshll.u32 %s643_s0, 4  ;;  %s33_s22 = int_to_ptr.vmem [resolvable:$true] %s32_s22  ;;  %s18_s25 = int_to_ptr.hbm [resolvable:$true] %s17_s25 }
   0x4   :  { %s560_s26 = smov 64   ;;  %s561_s27 = smov 4  }
   0x5   :  { %38 = dma.hbm_to_vmem [thread:$0]  %s31_s20, 1024, %s33_s22, [#allocation6], %s560_s26, %s560_s26, %s561_s27  }
   0x6   :  { %s562_s28 = smov [#allocation2]   ;;  %s45_s1 = sshll.u32 %s646_s3, 4  ;;  %s46_s1 = int_to_ptr.hbm [resolvable:$true] %s45_s1 }
   0x7   :  { %s19_s29 = sshll.u32 %s562_s28, 4  ;;  %s563_s0 = smov [#allocation7]   ;;  %s20_s29 = int_to_ptr.vmem [resolvable:$true] %s19_s29 }
   0x8   :  { %25 = dma.hbm_to_vmem [thread:$0]  %s18_s25, 128, %s20_s29, [#allocation3], %s560_s26, %s560_s26, %s561_s27  }
   0x9   :  { %s47_s7 = sshll.u32 %s563_s0, 4  ;;  %s48_s7 = int_to_ptr.vmem [resolvable:$true] %s47_s7 }
   0xa   :  { %53 = dma.hbm_to_vmem [thread:$0]  %s46_s1, 1024, %s48_s7, [#allocation6], %s560_s26, %s560_s26, %s561_s27  }
   0xb   :  { %553 = dma.done.wait [#allocation3], 128  }
   0xc   :  { %554 = vsyncadd [#allocation3], 4294967168 }
   0xd   :  { %555 = dma.done.wait [#allocation6], 2048  }
   0xe   :  { %556 = vsyncadd [#allocation6], 4294965248  ;;  %v431_v0 = vld [vmem:[#allocation5 + $0x38] sm:$0xff]  ;;  %v430_v1 = vld [vmem:[#allocation5 + $0x30] sm:$0xff]  ;;  %s564_s10 = smov [#allocation8]   ;;  %s339_s14 = sshll.u32 %s648_s5, 4  ;;  %s340_s14 = int_to_ptr.hbm [resolvable:$true] %s339_s14 }
   0xf   :  { %144 = vmatpush.bf16.msra.mxu0 %v431_v0  ;;  %v429_v2 = vld [vmem:[#allocation5 + $0x28] sm:$0xff]  ;;  %v428_v3 = vld [vmem:[#allocation5 + $0x20] sm:$0xff]  ;;  %v427_v4 = vld [vmem:[#allocation5 + $0x18] sm:$0xff]  ;;  %s337_s11 = sshll.u32 %s564_s10, 4  ;;  %s338_s11 = int_to_ptr.vmem [resolvable:$true] %s337_s11 }
  0x10   :  { %v426_v5 = vld [vmem:[#allocation5 + $0x10] sm:$0xff]  ;;  %v425_v6 = vld [vmem:[#allocation5 + $0x8] sm:$0xff]  ;;  %v424_v7 = vld [vmem:[#allocation5] sm:$0xff] }
  0x11   :  { %v423_v8 = vld [vmem:[#allocation2] sm:$0xff]  ;;  %v438_v14 = vld [vmem:[#allocation7 + $0x30] sm:$0xff]  ;;  %v437_v16 = vld [vmem:[#allocation7 + $0x28] sm:$0xff] }
  0x12   :  { %v451_v9 = vld [vmem:[%s645_s2] ss:$0 sm:$0xff]  ;;  %v436_v21 = vld [vmem:[#allocation7 + $0x20] sm:$0xff]  ;;  %v434_v33 = vld [vmem:[#allocation7 + $0x10] sm:$0xff] }
  0x13   :  { %145 = vmatpush.bf16.msra.mxu0 %v430_v1  ;;  %v439_v10 = vld [vmem:[#allocation7 + $0x38] sm:$0xff]  ;;  %v433_v41 = vld [vmem:[#allocation7 + $0x8] sm:$0xff]  ;;  %v432_v48 = vld [vmem:[#allocation7] sm:$0xff] }
  0x14   :  { %315 = vmatpush.bf16.msra.mxu1 %v439_v10  ;;  %v435_v27 = vld [vmem:[#allocation7 + $0x18] sm:$0xff] }
  0x17   :  { %146 = vmatpush.bf16.msra.mxu0 %v429_v2 }
  0x18   :  { %316 = vmatpush.bf16.msra.mxu1 %v438_v14 }
  0x1b   :  { %147 = vmatpush.bf16.msra.mxu0 %v428_v3 }
  0x1c   :  { %317 = vmatpush.bf16.msra.mxu1 %v437_v16 }
  0x1f   :  { %148 = vmatpush.bf16.msra.mxu0 %v427_v4 }
  0x20   :  { %318 = vmatpush.bf16.msra.mxu1 %v436_v21 }
  0x23   :  { %149 = vmatpush.bf16.msra.mxu0 %v426_v5 }
  0x24   :  { %319 = vmatpush.bf16.msra.mxu1 %v435_v27 }
  0x27   :  { %150 = vmatpush.bf16.msra.mxu0 %v425_v6 }
  0x28   :  { %320 = vmatpush.bf16.msra.mxu1 %v434_v33 }
  0x2b   :  { %151 = vmatpush.bf16.msra.mxu0 %v424_v7 }
  0x2c   :  { %321 = vmatpush.bf16.msra.mxu1 %v433_v41 }
  0x2e   :  { %152 = vmatmul.bf16.vlgmr.msra.gmra.mxu0 %v423_v8 }
  0x30   :  { %322 = vmatpush.bf16.msra.mxu1 %v432_v48 }
  0xab   :  { %v153_v11 = vpop.f32.mrf.mxu0 }
  0xac   :  { %v616_v12 = vadd.f32 %v451_v9, %v153_v11 }
  0xae   :  { %v619_v13 = vmul.f32 0.70710677, %v616_v12 }
  0xb0   :  { %v162_v15 = vmul.f32 %v619_v13, %v619_v13 }
  0xb2   :  { %v163_v17 = vmin.f32 %v162_v15, 16.0 }
  0xb3   :  { %v155_v18 = vpop.f32.mrf.mxu0 }
  0xb4   :  { %v164_v19 = vmul.f32 2.1237322e-06, %v163_v17  ;;  %v623_v20 = vadd.f32 %v451_v9, %v155_v18  ;;  %v175_v22 = vmul.f32 3.8918573e-05, %v163_v17 }
  0xb6   :  { %v165_v23 = vadd.f32 0.00028619796, %v164_v19  ;;  %v626_v24 = vmul.f32 0.70710677, %v623_v20  ;;  %v176_v25 = vadd.f32 0.001143296, %v175_v22 }
  0xb8   :  { %v202_v26 = vmul.f32 %v626_v24, %v626_v24  ;;  %v166_v28 = vmul.f32 %v165_v23, %v163_v17  ;;  %v177_v29 = vmul.f32 %v176_v25, %v163_v17 }
  0xba   :  { %v203_v30 = vmin.f32 %v202_v26, 16.0  ;;  %v178_v31 = vadd.f32 0.014752088, %v177_v29  ;;  %v167_v35 = vadd.f32 0.0036580483, %v166_v28 }
  0xbc   :  { %v204_v32 = vmul.f32 2.1237322e-06, %v203_v30  ;;  %v215_v34 = vmul.f32 3.8918573e-05, %v203_v30  ;;  %v179_v36 = vmul.f32 %v178_v31, %v163_v17  ;;  %v168_v43 = vmul.f32 %v167_v35, %v163_v17 }
  0xbd   :  { %v159_v35 = vmul.f32 0.5, %v623_v20 }
  0xbe   :  { %v205_v37 = vadd.f32 0.00028619796, %v204_v32  ;;  %v216_v38 = vadd.f32 0.001143296, %v215_v34  ;;  %v180_v39 = vadd.f32 0.112945676, %v179_v36 }
  0xbf   :  { %v169_v50 = vadd.f32 0.05243302, %v168_v43  ;;  %v158_v34 = vmul.f32 0.5, %v616_v12 }
  0xc0   :  { %v206_v40 = vmul.f32 %v205_v37, %v203_v30  ;;  %v217_v42 = vmul.f32 %v216_v38, %v203_v30  ;;  %v181_v44 = vmul.f32 %v180_v39, %v163_v17 }
  0xc1   :  { %v170_v56 = vmul.f32 %v169_v50, %v163_v17 }
  0xc2   :  { %v207_v45 = vadd.f32 0.0036580483, %v206_v40  ;;  %v218_v46 = vadd.f32 0.014752088, %v217_v42  ;;  %v182_v47 = vadd.f32 0.4994258, %v181_v44 }
  0xc3   :  { %v171_v60 = vadd.f32 0.18741608, %v170_v56 }
  0xc4   :  { %v219_v49 = vmul.f32 %v218_v46, %v203_v30  ;;  %v183_v51 = vmul.f32 %v182_v47, %v163_v17  ;;  %v208_v52 = vmul.f32 %v207_v45, %v203_v30 }
  0xc5   :  { %v172_v1 = vmul.f32 %v171_v60, %v163_v17 }
  0xc6   :  { %v220_v53 = vadd.f32 0.112945676, %v219_v49  ;;  %v184_v54 = vadd.f32 1.0, %v183_v51  ;;  %v209_v57 = vadd.f32 0.05243302, %v208_v52 }
  0xc7   :  { %v173_v7 = vadd.f32 1.1283791, %v172_v1 }
  0xc8   :  { %v221_v55 = vmul.f32 %v220_v53, %v203_v30  ;;  %453 = vrcp.f32 %v184_v54  ;;  %v210_v61 = vmul.f32 %v209_v57, %v203_v30  ;;  %v196_v4 = vand.u32 2147483648, %v184_v54 }
  0xc9   :  { %v194_v6 = vand.u32 2147483647, %v184_v54  ;;  %vm190_vm1 = vweird.f32 %v184_v54  ;;  %v174_v16 = vmul.f32 %v173_v7, %v619_v13 }
  0xca   :  { %v222_v58 = vadd.f32 0.4994258, %v221_v55  ;;  %v211_v2 = vadd.f32 0.18741608, %v210_v61  ;;  %v197_v11 = vor.u32 1.1754944e-38, %v196_v4 }
  0xcb   :  { %vm195_vm3 = vcmp.eq.f32.partialorder %v194_v6, 8.507059e+37 }
  0xcc   :  { %v223_v59 = vmul.f32 %v222_v58, %v203_v30  ;;  %v212_v9 = vmul.f32 %v211_v2, %v203_v30 }
  0xce   :  { %v224_v62 = vadd.f32 1.0, %v223_v59  ;;  %v454_v63 = vpop.eup %453  ;;  %v213_v19 = vadd.f32 1.1283791, %v212_v9 }
  0xcf   :  { %v186_v0 = vmul.f32 %v454_v63, %v184_v54  ;;  %vm191_vm0 = vweird.f32 %v454_v63 }
  0xd0   :  { %455 = vrcp.f32 %v224_v62  ;;  %vm192_vm2 = vmor %vm190_vm1, %vm191_vm0  ;;  %v236_v21 = vand.u32 2147483648, %v224_v62  ;;  %v234_v25 = vand.u32 2147483647, %v224_v62  ;;  %vm230_vm5 = vweird.f32 %v224_v62 }
  0xd1   :  { %v187_v3 = vsub.f32 1.0, %v186_v0  ;;  %v214_v28 = vmul.f32 %v213_v19, %v626_v24  ;;  %v452_v24 = vld [vmem:[%s647_s4] ss:$0 sm:$0xff] }
  0xd2   :  { %v237_v27 = vor.u32 1.1754944e-38, %v236_v21  ;;  %vm235_vm7 = vcmp.eq.f32.partialorder %v234_v25, 8.507059e+37 }
  0xd3   :  { %v188_v5 = vmul.f32 %v454_v63, %v187_v3 }
  0xd5   :  { %v189_v10 = vadd.f32 %v454_v63, %v188_v5 }
  0xd6   :  { %v456_v8 = vpop.eup %455 }
  0xd7   :  { %v226_v14 = vmul.f32 %v456_v8, %v224_v62  ;;  %v193_v15 = vsel %vm192_vm2, %v454_v63, %v189_v10  ;;  %vm231_vm4 = vweird.f32 %v456_v8 }
  0xd8   :  { %v198_v18 = vsel %vm195_vm3, %v197_v11, %v193_v15  ;;  %vm232_vm6 = vmor %vm230_vm5, %vm231_vm4 }
  0xd9   :  { %v227_v17 = vsub.f32 1.0, %v226_v14  ;;  %v199_v22 = vmul.f32 %v198_v18, %v174_v16 }
  0xdb   :  { %v228_v23 = vmul.f32 %v456_v8, %v227_v17  ;;  %v389_v29 = vclamps-f32 %v199_v22, 1.0 }
  0xdd   :  { %v229_v26 = vadd.f32 %v456_v8, %v228_v23  ;;  %v242_v33 = vadd.f32 1.0, %v389_v29 }
  0xdf   :  { %v233_v30 = vsel %vm232_vm6, %v456_v8, %v229_v26  ;;  %v244_v37 = vmul.f32 %v242_v33, %v158_v34 }
  0xe0   :  { %v238_v31 = vsel %vm235_vm7, %v237_v27, %v233_v30 }
  0xe1   :  { %v239_v32 = vmul.f32 %v238_v31, %v214_v28 }
  0xe3   :  { %v390_v13 = vclamps-f32 %v239_v32, 1.0 }
  0xe5   :  { %v243_v36 = vadd.f32 1.0, %v390_v13 }
  0xe7   :  { %v245_v38 = vmul.f32 %v243_v36, %v159_v35 }
  0xe9   :  { %v246_v39 = vpack.c.bf16 %v245_v38, %v244_v37 }
  0xeb   :  { %323 = vmatmul.bf16.vlgmr.msra.gmra.mxu1 %v246_v39 }
 0x168   :  { %v324_v40 = vpop.f32.mrf.mxu1 }
 0x169   :  { %v325_v12 = vadd.f32 %v452_v24, %v324_v40 }
 0x170   :  { %v326_v41 = vpop.f32.mrf.mxu1 }
 0x171   :  { %v327_v42 = vadd.f32 %v452_v24, %v326_v41 }
 0x173   :  { %v443_v20 = vpack.c.bf16 %v327_v42, %v325_v12 }
 0x175   :  { %444 = vst [vmem:[#allocation8] sm:$0xff] %v443_v20  }
 0x176   :  { %345 = dma.vmem_to_hbm [thread:$0]  %s338_s11, 128, %s340_s14, [#allocation4], %s560_s26, %s560_s26, %s561_s27  }
 0x177   :  { %557 = dma.done.wait [#allocation4], 128  }
 0x178   :  { %558 = vsyncadd [#allocation4], 4294967168 }
 0x179   :  { %350 = vsyncpa [#allocation3], 1 }
 0x17a   :  { %351 = vsyncpa [#allocation6], 1 }
 0x17b   :  { %352 = vsyncpa [#allocation4], 1 }

</bundles_post_ra>
